<compile_context>
chip_gen: v7x
topology: tpu7x:2x2x1
jax: 0.10.0
libtpu: 0.0.40
codegen_flags: <defaults>
</compile_context>

<pallas_src>
import jax
import jax.numpy as jnp
from jax import lax
from jax.experimental import pallas as pl
from jax.experimental.pallas import tpu as pltpu

JACOBI_WEIGHT = 2.0 / 3.0   # wJacobi weight
SMOOTHING_NUM = 3           # pre/post smoothing sweeps (collapsed into M^3 / K)
COARSE_NUM = 10             # coarse-level Jacobi sweeps (collapsed into K_c)
LANE_TILE = 128             # RHS slab width -> lane-dense matmuls & stores


def _dot(a, b):
    return jnp.dot(a, b, preferred_element_type=jnp.float32)


def _pt_dot(P, X):
    """P^T @ X without materializing the transpose (MXU contracts dim 0)."""
    return lax.dot_general(P, X, dimension_numbers=(((0,), (0,)), ((), ())),
                           preferred_element_type=jnp.float32)


def _eye_wdiag(Amat, w):
    """Identity, w/diag(A) as (n,1) row-scale and (1,n) col-scale (no transposes)."""
    n = Amat.shape[0]
    rows = lax.broadcasted_iota(jnp.int32, (n, n), 0)
    cols = lax.broadcasted_iota(jnp.int32, (n, n), 1)
    on_diag = rows == cols
    eye = jnp.where(on_diag, jnp.float32(1.0), jnp.float32(0.0))
    diag_only = jnp.where(on_diag, Amat, 0.0)
    # TODO(synk): like the reference, no guard against (near-)zero Galerkin diagonals.
    wd_col = w / jnp.sum(diag_only, axis=1, keepdims=True)   # (n, 1)
    wd_row = w / jnp.sum(diag_only, axis=0, keepdims=True)   # (1, n)
    return eye, wd_col, wd_row


# --------------------------- setup kernel (run once) ---------------------------
def _make_setup_kernel(num_levels):
    """Signature: (A, P_0..P_{L-2},  [M3_l, K_l, PtA_l, M3P_l]*, Kc)."""

    def kernel(*refs):
        A0 = refs[0][...]
        Ps = [refs[1 + i][...] for i in range(num_levels - 1)]
        out_refs = refs[num_levels:]
        w = jnp.float32(JACOBI_WEIGHT)

        # Galerkin hierarchy; PtA_l = P_l^T A_l falls out for free.
        As, PtAs = [A0], []
        for P in Ps:
            PtA = _pt_dot(P, As[-1])                 # (n_{l+1}, n_l)
            PtAs.append(PtA)
            As.append(_dot(PtA, P))                  # A_{l+1} = (P^T A_l) P_l

        oi = 0
        for l in range(num_levels - 1):              # smoothing levels
            Al = As[l]
            eye, wd_col, wd_row = _eye_wdiag(Al, w)
            M = eye - wd_col * Al                    # one Jacobi sweep matrix
            M2 = _dot(M, M)
            M3 = _dot(M2, M)
            K = (eye + M + M2) * wd_row              # 3 sweeps: x <- M^3 x + K b
            M3P = _dot(M3, Ps[l])                    # fused correction + post-smooth
            out_refs[oi][...] = M3; oi += 1
            out_refs[oi][...] = K; oi += 1
            out_refs[oi][...] = PtAs[l]; oi += 1
            out_refs[oi][...] = M3P; oi += 1

        Ac = As[-1]                                  # coarsest: 10 sweeps, zero guess
        eye_c, wdc_col, wdc_row = _eye_wdiag(Ac, w)
        Mc = eye_c - wdc_col * Ac
        S, Mk = eye_c, eye_c
        for _ in range(COARSE_NUM - 1):
            Mk = _dot(Mk, Mc)
            S = S + Mk
        out_refs[oi][...] = S * wdc_row              # Kc: e_c = Kc @ rhs_c

    return kernel


# ------------------------ V-cycle kernel (per RHS tile) ------------------------
def _make_vcycle_kernel(num_levels, num_iters):
    nsl = num_levels - 1                             # number of smoothing levels

    def kernel(*refs):
        idx = 0
        Ps = [refs[idx + i][...] for i in range(nsl)]; idx += nsl
        M3s = [refs[idx + i][...] for i in range(nsl)]; idx += nsl
        Ks = [refs[idx + i][...] for i in range(nsl)]; idx += nsl
        PtAs = [refs[idx + i][...] for i in range(nsl)]; idx += nsl
        M3Ps = [refs[idx + i][...] for i in range(nsl)]; idx += nsl
        Kc = refs[idx][...]; idx += 1
        b = refs[idx][...]; idx += 1
        x0 = refs[idx][...]; idx += 1
        o_ref = refs[idx]

        # Level-0 products that are invariant across all V-cycles (b is fixed).
        Krhs0 = _dot(Ks[0], b)                       # K_0 b
        Ptb0 = _pt_dot(Ps[0], b)                     # P_0^T b

        def vcycle(lvl, rhs, xv, Krhs=None, Ptrhs=None):
            if lvl == num_levels - 1:                # coarse solve: one matmul
                return _dot(Kc, rhs)
            if Krhs is None:
                Krhs = _dot(Ks[lvl], rhs)
            if xv is None:                           # zero incoming guess
                x_pre = Krhs
            else:                                    # pre-smooth (3 collapsed sweeps)
                x_pre = _dot(M3s[lvl], xv) + Krhs
            M3x_pre = _dot(M3s[lvl], x_pre)          # off critical path; reused below
            if Ptrhs is None:
                Ptrhs = _pt_dot(Ps[lvl], rhs)
            r_c = Ptrhs - _dot(PtAs[lvl], x_pre)     # fused restriction P^T(rhs - A x)
            e_c = vcycle(lvl + 1, r_c, None)
            # fused correction + post-smooth: M^3 (x_pre + P e_c) + K rhs
            return M3x_pre + _dot(M3Ps[lvl], e_c) + Krhs

        def body(_, xv):
            return vcycle(0, b, xv, Krhs=Krhs0, Ptrhs=Ptb0)

        o_ref[...] = lax.fori_loop(0, num_iters, body, x0)

    return kernel


def train_p_forward(A, P_list, b, x, num_iters):
    """JAX/Pallas equivalent of TrainP.forward(b, x); b, x are (n, k) columns."""
    num_levels = len(P_list) + 1
    assert num_levels >= 2
    nf, ncols = b.shape
    sizes = [A.shape[0]] + [P.shape[1] for P in P_list]

    A32 = A.astype(jnp.float32)
    Ps32 = tuple(P.astype(jnp.float32) for P in P_list)
    ops = (A32,) + Ps32

    # ----------------- 1) one-shot operator setup kernel -----------------
    out_shapes = []
    for l in range(num_levels - 1):
        nl, nlc = sizes[l], sizes[l + 1]
        out_shapes += [jax.ShapeDtypeStruct((nl, nl), jnp.float32),    # M3_l
                       jax.ShapeDtypeStruct((nl, nl), jnp.float32),    # K_l
                       jax.ShapeDtypeStruct((nlc, nl), jnp.float32),   # PtA_l
                       jax.ShapeDtypeStruct((nl, nlc), jnp.float32)]   # M3P_l
    ncoarse = sizes[-1]
    out_shapes.append(jax.ShapeDtypeStruct((ncoarse, ncoarse), jnp.float32))  # Kc

    setup_outs = pl.pallas_call(
        _make_setup_kernel(num_levels),
        out_shape=tuple(out_shapes),
        grid=(1,),
        in_specs=[pl.BlockSpec(op.shape, lambda i: (0, 0)) for op in ops],
        out_specs=tuple(pl.BlockSpec(s.shape, lambda i: (0, 0)) for s in out_shapes),
    )(*ops)

    M3s, Ks, PtAs, M3Ps = [], [], [], []
    for l in range(num_levels - 1):
        M3s.append(setup_outs[4 * l + 0])
        Ks.append(setup_outs[4 * l + 1])
        PtAs.append(setup_outs[4 * l + 2])
        M3Ps.append(setup_outs[4 * l + 3])
    Kc = setup_outs[-1]

    # ----------------- 2) V-cycle kernel over lane-dense tiles -----------------
    ncols_pad = pl.cdiv(ncols, LANE_TILE) * LANE_TILE
    b_p = jnp.pad(b.astype(jnp.float32), ((0, 0), (0, ncols_pad - ncols)))
    x_p = jnp.pad(x.astype(jnp.float32), ((0, 0), (0, ncols_pad - ncols)))
    num_tiles = ncols_pad // LANE_TILE

    mat_inputs = Ps32 + tuple(M3s) + tuple(Ks) + tuple(PtAs) + tuple(M3Ps) + (Kc,)
    mat_specs = [pl.BlockSpec(m.shape, lambda j: (0, 0)) for m in mat_inputs]
    vec_spec = pl.BlockSpec((nf, LANE_TILE), lambda j: (0, j))

    out = pl.pallas_call(
        _make_vcycle_kernel(num_levels, num_iters),
        out_shape=jax.ShapeDtypeStruct((nf, ncols_pad), jnp.float32),
        grid=(num_tiles,),
        in_specs=mat_specs + [vec_spec, vec_spec],
        out_specs=vec_spec,
        compiler_params=pltpu.CompilerParams(
            dimension_semantics=("parallel",)),   # RHS tiles -> both TCs on v7x
    )(*mat_inputs, b_p, x_p)
    return out[:, :ncols]


if __name__ == "__main__":
    key = jax.random.PRNGKey(0)
    nf, nc1, nc2 = 32, 16, 8       # fine / intermediate / coarse sizes
    num = 2                        # self.num V-cycle iterations

    # A: 1D Poisson operator (SPD), densified.
    A = (2.0 * jnp.eye(nf) - jnp.eye(nf, k=1) - jnp.eye(nf, k=-1)).astype(jnp.float32)

    def make_P(k, n_fine, n_coarse):
        # Aggregation-style prolongation (the learnable sparse values of the
        # ParameterList), perturbed deterministically on its sparsity pattern.
        ratio = n_fine // n_coarse
        cols = jnp.arange(n_fine) // ratio
        base = (cols[:, None] == jnp.arange(n_coarse)[None, :]).astype(jnp.float32)
        noise = 0.05 * jax.random.normal(k, (n_fine, n_coarse), dtype=jnp.float32)
        return base + noise * base

    k1, k2, kb = jax.random.split(key, 3)
    P0 = make_P(k1, nf, nc1)
    P1 = make_P(k2, nc1, nc2)

    b = jax.random.normal(kb, (nf, 1), dtype=jnp.float32)
    x0 = jnp.zeros((nf, 1), dtype=jnp.float32)

    x_out = train_p_forward(A, [P0, P1], b, x0, num)
    jax.block_until_ready(x_out)

    # Sanity: multigrid should reduce the residual norm and stay finite.
    r0 = float(jnp.linalg.norm(b - A @ x0))
    r1 = float(jnp.linalg.norm(b - A @ x_out))
    assert jnp.isfinite(x_out).all()
    assert r1 < r0

    print("KERNEL_OK")
</pallas_src>

<mosaic_0001>
module attributes {stable_mosaic.version = 11 : i64} {
  func.func @kernel(%arg0: i32, %arg1: memref<32x32xf32, #tpu.memory_space<vmem>>, %arg2: memref<32x16xf32, #tpu.memory_space<vmem>>, %arg3: memref<16x8xf32, #tpu.memory_space<vmem>>, %arg4: memref<32x32xf32, #tpu.memory_space<vmem>>, %arg5: memref<32x32xf32, #tpu.memory_space<vmem>>, %arg6: memref<16x32xf32, #tpu.memory_space<vmem>>, %arg7: memref<32x16xf32, #tpu.memory_space<vmem>>, %arg8: memref<16x16xf32, #tpu.memory_space<vmem>>, %arg9: memref<16x16xf32, #tpu.memory_space<vmem>>, %arg10: memref<8x16xf32, #tpu.memory_space<vmem>>, %arg11: memref<16x8xf32, #tpu.memory_space<vmem>>, %arg12: memref<8x8xf32, #tpu.memory_space<vmem>>) attributes {dimension_semantics = [#tpu.dimension_semantics<arbitrary>], iteration_bounds = array<i64: 1>, scalar_prefetch = 0 : i64, scratch_operands = 0 : i64, tpu.core_type = #tpu.core_type<tc>, window_params = [{pipeline_mode = #tpu.pipeline_mode<synchronous>, transform_indices = @transform_0, window_bounds = array<i64: 32, 32>}, {pipeline_mode = #tpu.pipeline_mode<synchronous>, transform_indices = @transform_1, window_bounds = array<i64: 32, 16>}, {pipeline_mode = #tpu.pipeline_mode<synchronous>, transform_indices = @transform_2, window_bounds = array<i64: 16, 8>}, {pipeline_mode = #tpu.pipeline_mode<synchronous>, transform_indices = @transform_3, window_bounds = array<i64: 32, 32>}, {pipeline_mode = #tpu.pipeline_mode<synchronous>, transform_indices = @transform_4, window_bounds = array<i64: 32, 32>}, {pipeline_mode = #tpu.pipeline_mode<synchronous>, transform_indices = @transform_5, window_bounds = array<i64: 16, 32>}, {pipeline_mode = #tpu.pipeline_mode<synchronous>, transform_indices = @transform_6, window_bounds = array<i64: 32, 16>}, {pipeline_mode = #tpu.pipeline_mode<synchronous>, transform_indices = @transform_7, window_bounds = array<i64: 16, 16>}, {pipeline_mode = #tpu.pipeline_mode<synchronous>, transform_indices = @transform_8, window_bounds = array<i64: 16, 16>}, {pipeline_mode = #tpu.pipeline_mode<synchronous>, transform_indices = @transform_9, window_bounds = array<i64: 8, 16>}, {pipeline_mode = #tpu.pipeline_mode<synchronous>, transform_indices = @transform_10, window_bounds = array<i64: 16, 8>}, {pipeline_mode = #tpu.pipeline_mode<synchronous>, transform_indices = @transform_11, window_bounds = array<i64: 8, 8>}]} {
    %c0 = arith.constant 0 : index
    %c0_0 = arith.constant 0 : index
    %0 = vector.load %arg1[%c0, %c0_0] : memref<32x32xf32, #tpu.memory_space<vmem>>, vector<32x32xf32>
    %c0_1 = arith.constant 0 : index
    %c0_2 = arith.constant 0 : index
    %1 = vector.load %arg2[%c0_1, %c0_2] : memref<32x16xf32, #tpu.memory_space<vmem>>, vector<32x16xf32>
    %c0_3 = arith.constant 0 : index
    %c0_4 = arith.constant 0 : index
    %2 = vector.load %arg3[%c0_3, %c0_4] : memref<16x8xf32, #tpu.memory_space<vmem>>, vector<16x8xf32>
    %cst = arith.constant dense<0.000000e+00> : vector<16x32xf32>
    %3 = tpu.matmul %1, %0, %cst {dimension_numbers = #tpu.dot_dimension_numbers<[0], [0], [1], [1], [0, 1, 1, 1], [], []>} : vector<32x16xf32>, vector<32x32xf32>, vector<16x32xf32> -> vector<16x32xf32>
    %cst_5 = arith.constant dense<0.000000e+00> : vector<16x16xf32>
    %4 = tpu.matmul %3, %1, %cst_5 {dimension_numbers = #tpu.dot_dimension_numbers<[1], [0], [0], [1], [0, 0, 1, 1], [], []>} : vector<16x32xf32>, vector<32x16xf32>, vector<16x16xf32> -> vector<16x16xf32>
    %cst_6 = arith.constant dense<0.000000e+00> : vector<8x16xf32>
    %5 = tpu.matmul %2, %4, %cst_6 {dimension_numbers = #tpu.dot_dimension_numbers<[0], [0], [1], [1], [0, 1, 1, 1], [], []>} : vector<16x8xf32>, vector<16x16xf32>, vector<8x16xf32> -> vector<8x16xf32>
    %cst_7 = arith.constant dense<0.000000e+00> : vector<8x8xf32>
    %6 = tpu.matmul %5, %2, %cst_7 {dimension_numbers = #tpu.dot_dimension_numbers<[1], [0], [0], [1], [0, 0, 1, 1], [], []>} : vector<8x16xf32>, vector<16x8xf32>, vector<8x8xf32> -> vector<8x8xf32>
    %7 = tpu.iota {dimensions = array<i32: 0>} : vector<32x32xi32>
    %8 = tpu.iota {dimensions = array<i32: 1>} : vector<32x32xi32>
    %9 = arith.cmpi eq, %7, %8 : vector<32x32xi32>
    %cst_8 = arith.constant 1.000000e+00 : f32
    %cst_9 = arith.constant 0.000000e+00 : f32
    %10 = vector.broadcast %cst_8 : f32 to vector<32x32xf32>
    %11 = vector.broadcast %cst_9 : f32 to vector<32x32xf32>
    %12 = arith.select %9, %10, %11 : vector<32x32xi1>, vector<32x32xf32>
    %cst_10 = arith.constant 0.000000e+00 : f32
    %13 = vector.broadcast %cst_10 : f32 to vector<32x32xf32>
    %14 = arith.select %9, %0, %13 : vector<32x32xi1>, vector<32x32xf32>
    %cst_11 = arith.constant dense<0.000000e+00> : vector<32xf32>
    %15 = vector.multi_reduction <add>, %14, %cst_11 [1] : vector<32x32xf32> to vector<32xf32>
    %16 = vector.shape_cast %15 : vector<32xf32> to vector<32x1xf32>
    %cst_12 = arith.constant 0.666666686 : f32
    %17 = vector.broadcast %cst_12 : f32 to vector<32x1xf32>
    %18 = arith.divf %17, %16 : vector<32x1xf32>
    %cst_13 = arith.constant dense<0.000000e+00> : vector<32xf32>
    %19 = vector.multi_reduction <add>, %14, %cst_13 [0] : vector<32x32xf32> to vector<32xf32>
    %20 = vector.shape_cast %19 : vector<32xf32> to vector<1x32xf32>
    %cst_14 = arith.constant 0.666666686 : f32
    %21 = vector.broadcast %cst_14 : f32 to vector<1x32xf32>
    %22 = arith.divf %21, %20 : vector<1x32xf32>
    %23 = vector.broadcast %18 : vector<32x1xf32> to vector<32x32xf32>
    %24 = arith.mulf %23, %0 : vector<32x32xf32>
    %25 = arith.subf %12, %24 : vector<32x32xf32>
    %cst_15 = arith.constant dense<0.000000e+00> : vector<32x32xf32>
    %26 = tpu.matmul %25, %25, %cst_15 {dimension_numbers = #tpu.dot_dimension_numbers<[1], [0], [0], [1], [0, 0, 1, 1], [], []>} : vector<32x32xf32>, vector<32x32xf32>, vector<32x32xf32> -> vector<32x32xf32>
    %cst_16 = arith.constant dense<0.000000e+00> : vector<32x32xf32>
    %27 = tpu.matmul %26, %25, %cst_16 {dimension_numbers = #tpu.dot_dimension_numbers<[1], [0], [0], [1], [0, 0, 1, 1], [], []>} : vector<32x32xf32>, vector<32x32xf32>, vector<32x32xf32> -> vector<32x32xf32>
    %28 = arith.addf %12, %25 : vector<32x32xf32>
    %29 = arith.addf %28, %26 : vector<32x32xf32>
    %30 = vector.broadcast %22 : vector<1x32xf32> to vector<32x32xf32>
    %31 = arith.mulf %29, %30 : vector<32x32xf32>
    %cst_17 = arith.constant dense<0.000000e+00> : vector<32x16xf32>
    %32 = tpu.matmul %27, %1, %cst_17 {dimension_numbers = #tpu.dot_dimension_numbers<[1], [0], [0], [1], [0, 0, 1, 1], [], []>} : vector<32x32xf32>, vector<32x16xf32>, vector<32x16xf32> -> vector<32x16xf32>
    %c0_18 = arith.constant 0 : index
    %c0_19 = arith.constant 0 : index
    %33 = vector.load %arg4[%c0_18, %c0_19] : memref<32x32xf32, #tpu.memory_space<vmem>>, vector<32x32xf32>
    tpu.vector_store %arg4[%c0_18, %c0_19], %27 {strides = array<i32>} : memref<32x32xf32, #tpu.memory_space<vmem>>, vector<32x32xf32>,
    %c0_20 = arith.constant 0 : index
    %c0_21 = arith.constant 0 : index
    %34 = vector.load %arg5[%c0_20, %c0_21] : memref<32x32xf32, #tpu.memory_space<vmem>>, vector<32x32xf32>
    tpu.vector_store %arg5[%c0_20, %c0_21], %31 {strides = array<i32>} : memref<32x32xf32, #tpu.memory_space<vmem>>, vector<32x32xf32>,
    %c0_22 = arith.constant 0 : index
    %c0_23 = arith.constant 0 : index
    %35 = vector.load %arg6[%c0_22, %c0_23] : memref<16x32xf32, #tpu.memory_space<vmem>>, vector<16x32xf32>
    tpu.vector_store %arg6[%c0_22, %c0_23], %3 {strides = array<i32>} : memref<16x32xf32, #tpu.memory_space<vmem>>, vector<16x32xf32>,
    %c0_24 = arith.constant 0 : index
    %c0_25 = arith.constant 0 : index
    %36 = vector.load %arg7[%c0_24, %c0_25] : memref<32x16xf32, #tpu.memory_space<vmem>>, vector<32x16xf32>
    tpu.vector_store %arg7[%c0_24, %c0_25], %32 {strides = array<i32>} : memref<32x16xf32, #tpu.memory_space<vmem>>, vector<32x16xf32>,
    %37 = tpu.iota {dimensions = array<i32: 0>} : vector<16x16xi32>
    %38 = tpu.iota {dimensions = array<i32: 1>} : vector<16x16xi32>
    %39 = arith.cmpi eq, %37, %38 : vector<16x16xi32>
    %cst_26 = arith.constant 1.000000e+00 : f32
    %cst_27 = arith.constant 0.000000e+00 : f32
    %40 = vector.broadcast %cst_26 : f32 to vector<16x16xf32>
    %41 = vector.broadcast %cst_27 : f32 to vector<16x16xf32>
    %42 = arith.select %39, %40, %41 : vector<16x16xi1>, vector<16x16xf32>
    %cst_28 = arith.constant 0.000000e+00 : f32
    %43 = vector.broadcast %cst_28 : f32 to vector<16x16xf32>
    %44 = arith.select %39, %4, %43 : vector<16x16xi1>, vector<16x16xf32>
    %cst_29 = arith.constant dense<0.000000e+00> : vector<16xf32>
    %45 = vector.multi_reduction <add>, %44, %cst_29 [1] : vector<16x16xf32> to vector<16xf32>
    %46 = vector.shape_cast %45 : vector<16xf32> to vector<16x1xf32>
    %cst_30 = arith.constant 0.666666686 : f32
    %47 = vector.broadcast %cst_30 : f32 to vector<16x1xf32>
    %48 = arith.divf %47, %46 : vector<16x1xf32>
    %cst_31 = arith.constant dense<0.000000e+00> : vector<16xf32>
    %49 = vector.multi_reduction <add>, %44, %cst_31 [0] : vector<16x16xf32> to vector<16xf32>
    %50 = vector.shape_cast %49 : vector<16xf32> to vector<1x16xf32>
    %cst_32 = arith.constant 0.666666686 : f32
    %51 = vector.broadcast %cst_32 : f32 to vector<1x16xf32>
    %52 = arith.divf %51, %50 : vector<1x16xf32>
    %53 = vector.broadcast %48 : vector<16x1xf32> to vector<16x16xf32>
    %54 = arith.mulf %53, %4 : vector<16x16xf32>
    %55 = arith.subf %42, %54 : vector<16x16xf32>
    %cst_33 = arith.constant dense<0.000000e+00> : vector<16x16xf32>
    %56 = tpu.matmul %55, %55, %cst_33 {dimension_numbers = #tpu.dot_dimension_numbers<[1], [0], [0], [1], [0, 0, 1, 1], [], []>} : vector<16x16xf32>, vector<16x16xf32>, vector<16x16xf32> -> vector<16x16xf32>
    %cst_34 = arith.constant dense<0.000000e+00> : vector<16x16xf32>
    %57 = tpu.matmul %56, %55, %cst_34 {dimension_numbers = #tpu.dot_dimension_numbers<[1], [0], [0], [1], [0, 0, 1, 1], [], []>} : vector<16x16xf32>, vector<16x16xf32>, vector<16x16xf32> -> vector<16x16xf32>
    %58 = arith.addf %42, %55 : vector<16x16xf32>
    %59 = arith.addf %58, %56 : vector<16x16xf32>
    %60 = vector.broadcast %52 : vector<1x16xf32> to vector<16x16xf32>
    %61 = arith.mulf %59, %60 : vector<16x16xf32>
    %cst_35 = arith.constant dense<0.000000e+00> : vector<16x8xf32>
    %62 = tpu.matmul %57, %2, %cst_35 {dimension_numbers = #tpu.dot_dimension_numbers<[1], [0], [0], [1], [0, 0, 1, 1], [], []>} : vector<16x16xf32>, vector<16x8xf32>, vector<16x8xf32> -> vector<16x8xf32>
    %c0_36 = arith.constant 0 : index
    %c0_37 = arith.constant 0 : index
    %63 = vector.load %arg8[%c0_36, %c0_37] : memref<16x16xf32, #tpu.memory_space<vmem>>, vector<16x16xf32>
    tpu.vector_store %arg8[%c0_36, %c0_37], %57 {strides = array<i32>} : memref<16x16xf32, #tpu.memory_space<vmem>>, vector<16x16xf32>,
    %c0_38 = arith.constant 0 : index
    %c0_39 = arith.constant 0 : index
    %64 = vector.load %arg9[%c0_38, %c0_39] : memref<16x16xf32, #tpu.memory_space<vmem>>, vector<16x16xf32>
    tpu.vector_store %arg9[%c0_38, %c0_39], %61 {strides = array<i32>} : memref<16x16xf32, #tpu.memory_space<vmem>>, vector<16x16xf32>,
    %c0_40 = arith.constant 0 : index
    %c0_41 = arith.constant 0 : index
    %65 = vector.load %arg10[%c0_40, %c0_41] : memref<8x16xf32, #tpu.memory_space<vmem>>, vector<8x16xf32>
    tpu.vector_store %arg10[%c0_40, %c0_41], %5 {strides = array<i32>} : memref<8x16xf32, #tpu.memory_space<vmem>>, vector<8x16xf32>,
    %c0_42 = arith.constant 0 : index
    %c0_43 = arith.constant 0 : index
    %66 = vector.load %arg11[%c0_42, %c0_43] : memref<16x8xf32, #tpu.memory_space<vmem>>, vector<16x8xf32>
    tpu.vector_store %arg11[%c0_42, %c0_43], %62 {strides = array<i32>} : memref<16x8xf32, #tpu.memory_space<vmem>>, vector<16x8xf32>,
    %67 = tpu.iota {dimensions = array<i32: 0>} : vector<8x8xi32>
    %68 = tpu.iota {dimensions = array<i32: 1>} : vector<8x8xi32>
    %69 = arith.cmpi eq, %67, %68 : vector<8x8xi32>
    %cst_44 = arith.constant 1.000000e+00 : f32
    %cst_45 = arith.constant 0.000000e+00 : f32
    %70 = vector.broadcast %cst_44 : f32 to vector<8x8xf32>
    %71 = vector.broadcast %cst_45 : f32 to vector<8x8xf32>
    %72 = arith.select %69, %70, %71 : vector<8x8xi1>, vector<8x8xf32>
    %cst_46 = arith.constant 0.000000e+00 : f32
    %73 = vector.broadcast %cst_46 : f32 to vector<8x8xf32>
    %74 = arith.select %69, %6, %73 : vector<8x8xi1>, vector<8x8xf32>
    %cst_47 = arith.constant dense<0.000000e+00> : vector<8xf32>
    %75 = vector.multi_reduction <add>, %74, %cst_47 [1] : vector<8x8xf32> to vector<8xf32>
    %76 = vector.shape_cast %75 : vector<8xf32> to vector<8x1xf32>
    %cst_48 = arith.constant 0.666666686 : f32
    %77 = vector.broadcast %cst_48 : f32 to vector<8x1xf32>
    %78 = arith.divf %77, %76 : vector<8x1xf32>
    %cst_49 = arith.constant dense<0.000000e+00> : vector<8xf32>
    %79 = vector.multi_reduction <add>, %74, %cst_49 [0] : vector<8x8xf32> to vector<8xf32>
    %80 = vector.shape_cast %79 : vector<8xf32> to vector<1x8xf32>
    %cst_50 = arith.constant 0.666666686 : f32
    %81 = vector.broadcast %cst_50 : f32 to vector<1x8xf32>
    %82 = arith.divf %81, %80 : vector<1x8xf32>
    %83 = vector.broadcast %78 : vector<8x1xf32> to vector<8x8xf32>
    %84 = arith.mulf %83, %6 : vector<8x8xf32>
    %85 = arith.subf %72, %84 : vector<8x8xf32>
    %cst_51 = arith.constant dense<0.000000e+00> : vector<8x8xf32>
    %86 = tpu.matmul %72, %85, %cst_51 {dimension_numbers = #tpu.dot_dimension_numbers<[1], [0], [0], [1], [0, 0, 1, 1], [], []>} : vector<8x8xf32>, vector<8x8xf32>, vector<8x8xf32> -> vector<8x8xf32>
    %87 = arith.addf %72, %86 : vector<8x8xf32>
    %cst_52 = arith.constant dense<0.000000e+00> : vector<8x8xf32>
    %88 = tpu.matmul %86, %85, %cst_52 {dimension_numbers = #tpu.dot_dimension_numbers<[1], [0], [0], [1], [0, 0, 1, 1], [], []>} : vector<8x8xf32>, vector<8x8xf32>, vector<8x8xf32> -> vector<8x8xf32>
    %89 = arith.addf %87, %88 : vector<8x8xf32>
    %cst_53 = arith.constant dense<0.000000e+00> : vector<8x8xf32>
    %90 = tpu.matmul %88, %85, %cst_53 {dimension_numbers = #tpu.dot_dimension_numbers<[1], [0], [0], [1], [0, 0, 1, 1], [], []>} : vector<8x8xf32>, vector<8x8xf32>, vector<8x8xf32> -> vector<8x8xf32>
    %91 = arith.addf %89, %90 : vector<8x8xf32>
    %cst_54 = arith.constant dense<0.000000e+00> : vector<8x8xf32>
    %92 = tpu.matmul %90, %85, %cst_54 {dimension_numbers = #tpu.dot_dimension_numbers<[1], [0], [0], [1], [0, 0, 1, 1], [], []>} : vector<8x8xf32>, vector<8x8xf32>, vector<8x8xf32> -> vector<8x8xf32>
    %93 = arith.addf %91, %92 : vector<8x8xf32>
    %cst_55 = arith.constant dense<0.000000e+00> : vector<8x8xf32>
    %94 = tpu.matmul %92, %85, %cst_55 {dimension_numbers = #tpu.dot_dimension_numbers<[1], [0], [0], [1], [0, 0, 1, 1], [], []>} : vector<8x8xf32>, vector<8x8xf32>, vector<8x8xf32> -> vector<8x8xf32>
    %95 = arith.addf %93, %94 : vector<8x8xf32>
    %cst_56 = arith.constant dense<0.000000e+00> : vector<8x8xf32>
    %96 = tpu.matmul %94, %85, %cst_56 {dimension_numbers = #tpu.dot_dimension_numbers<[1], [0], [0], [1], [0, 0, 1, 1], [], []>} : vector<8x8xf32>, vector<8x8xf32>, vector<8x8xf32> -> vector<8x8xf32>
    %97 = arith.addf %95, %96 : vector<8x8xf32>
    %cst_57 = arith.constant dense<0.000000e+00> : vector<8x8xf32>
    %98 = tpu.matmul %96, %85, %cst_57 {dimension_numbers = #tpu.dot_dimension_numbers<[1], [0], [0], [1], [0, 0, 1, 1], [], []>} : vector<8x8xf32>, vector<8x8xf32>, vector<8x8xf32> -> vector<8x8xf32>
    %99 = arith.addf %97, %98 : vector<8x8xf32>
    %cst_58 = arith.constant dense<0.000000e+00> : vector<8x8xf32>
    %100 = tpu.matmul %98, %85, %cst_58 {dimension_numbers = #tpu.dot_dimension_numbers<[1], [0], [0], [1], [0, 0, 1, 1], [], []>} : vector<8x8xf32>, vector<8x8xf32>, vector<8x8xf32> -> vector<8x8xf32>
    %101 = arith.addf %99, %100 : vector<8x8xf32>
    %cst_59 = arith.constant dense<0.000000e+00> : vector<8x8xf32>
    %102 = tpu.matmul %100, %85, %cst_59 {dimension_numbers = #tpu.dot_dimension_numbers<[1], [0], [0], [1], [0, 0, 1, 1], [], []>} : vector<8x8xf32>, vector<8x8xf32>, vector<8x8xf32> -> vector<8x8xf32>
    %103 = arith.addf %101, %102 : vector<8x8xf32>
    %104 = vector.broadcast %82 : vector<1x8xf32> to vector<8x8xf32>
    %105 = arith.mulf %103, %104 : vector<8x8xf32>
    %c0_60 = arith.constant 0 : index
    %c0_61 = arith.constant 0 : index
    %106 = vector.load %arg12[%c0_60, %c0_61] : memref<8x8xf32, #tpu.memory_space<vmem>>, vector<8x8xf32>
    tpu.vector_store %arg12[%c0_60, %c0_61], %105 {strides = array<i32>} : memref<8x8xf32, #tpu.memory_space<vmem>>, vector<8x8xf32>,
    return
  }
  func.func @transform_0(%arg0: i32) -> (i32, i32) {
    %c0_i32 = arith.constant 0 : i32
    %c0_i32_0 = arith.constant 0 : i32
    %c0_i32_1 = arith.constant 0 : i32
    return %c0_i32, %c0_i32_0 : i32, i32
  }
  func.func @transform_1(%arg0: i32) -> (i32, i32) {
    %c0_i32 = arith.constant 0 : i32
    %c0_i32_0 = arith.constant 0 : i32
    %c0_i32_1 = arith.constant 0 : i32
    return %c0_i32, %c0_i32_0 : i32, i32
  }
  func.func @transform_2(%arg0: i32) -> (i32, i32) {
    %c0_i32 = arith.constant 0 : i32
    %c0_i32_0 = arith.constant 0 : i32
    %c0_i32_1 = arith.constant 0 : i32
    return %c0_i32, %c0_i32_0 : i32, i32
  }
  func.func @transform_3(%arg0: i32) -> (i32, i32) {
    %c0_i32 = arith.constant 0 : i32
    %c0_i32_0 = arith.constant 0 : i32
    %c0_i32_1 = arith.constant 0 : i32
    return %c0_i32, %c0_i32_0 : i32, i32
  }
  func.func @transform_4(%arg0: i32) -> (i32, i32) {
    %c0_i32 = arith.constant 0 : i32
    %c0_i32_0 = arith.constant 0 : i32
    %c0_i32_1 = arith.constant 0 : i32
    return %c0_i32, %c0_i32_0 : i32, i32
  }
  func.func @transform_5(%arg0: i32) -> (i32, i32) {
    %c0_i32 = arith.constant 0 : i32
    %c0_i32_0 = arith.constant 0 : i32
    %c0_i32_1 = arith.constant 0 : i32
    return %c0_i32, %c0_i32_0 : i32, i32
  }
  func.func @transform_6(%arg0: i32) -> (i32, i32) {
    %c0_i32 = arith.constant 0 : i32
    %c0_i32_0 = arith.constant 0 : i32
    %c0_i32_1 = arith.constant 0 : i32
    return %c0_i32, %c0_i32_0 : i32, i32
  }
  func.func @transform_7(%arg0: i32) -> (i32, i32) {
    %c0_i32 = arith.constant 0 : i32
    %c0_i32_0 = arith.constant 0 : i32
    %c0_i32_1 = arith.constant 0 : i32
    return %c0_i32, %c0_i32_0 : i32, i32
  }
  func.func @transform_8(%arg0: i32) -> (i32, i32) {
    %c0_i32 = arith.constant 0 : i32
    %c0_i32_0 = arith.constant 0 : i32
    %c0_i32_1 = arith.constant 0 : i32
    return %c0_i32, %c0_i32_0 : i32, i32
  }
  func.func @transform_9(%arg0: i32) -> (i32, i32) {
    %c0_i32 = arith.constant 0 : i32
    %c0_i32_0 = arith.constant 0 : i32
    %c0_i32_1 = arith.constant 0 : i32
    return %c0_i32, %c0_i32_0 : i32, i32
  }
  func.func @transform_10(%arg0: i32) -> (i32, i32) {
    %c0_i32 = arith.constant 0 : i32
    %c0_i32_0 = arith.constant 0 : i32
    %c0_i32_1 = arith.constant 0 : i32
    return %c0_i32, %c0_i32_0 : i32, i32
  }
  func.func @transform_11(%arg0: i32) -> (i32, i32) {
    %c0_i32 = arith.constant 0 : i32
    %c0_i32_0 = arith.constant 0 : i32
    %c0_i32_1 = arith.constant 0 : i32
    return %c0_i32, %c0_i32_0 : i32, i32
  }
}

</mosaic_0001>

<bundles_post_ra>
// kernel: tpu_custom_call.1
= control target key start
LH: loop header
LB: loop body
LE: loop exit
PB: predicated region body
PF: predicated region fallthrough
CT: control target
= control target key end

     0   :  { %17 = vsyncpa [#allocation3], 0  ;;  %s2880_s0 = inlined_call_operand.vmem [shape: f32[32,32], index: 0, kind: input, shape index: {}]   ;;  %s2881_s1 = inlined_call_operand.vmem [shape: f32[32,16], index: 1, kind: input, shape index: {}]   ;;  %s2882_s2 = inlined_call_operand.vmem [shape: f32[16,8], index: 2, kind: input, shape index: {}]   ;;  %s2883_s3 = inlined_call_operand.hbm [shape: f32[32,32], index: 3, kind: output, shape index: {0}]   ;;  %s2884_s4 = inlined_call_operand.hbm [shape: f32[32,32], index: 4, kind: output, shape index: {1}]   ;;  %s2885_s5 = inlined_call_operand.hbm [shape: f32[16,32], index: 5, kind: output, shape index: {2}]   ;;  %s2886_s6 = inlined_call_operand.vmem [shape: f32[32,16], index: 6, kind: output, shape index: {3}]   ;;  %s2887_s7 = inlined_call_operand.hbm [shape: f32[16,16], index: 7, kind: output, shape index: {4}]   ;;  %s2888_s8 = inlined_call_operand.hbm [shape: f32[16,16], index: 8, kind: output, shape index: {5}]   ;;  %s2889_s9 = inlined_call_operand.hbm [shape: f32[8,16], index: 9, kind: output, shape index: {6}]   ;;  %s2890_s10 = inlined_call_operand.vmem [shape: f32[16,8], index: 10, kind: output, shape index: {7}]   ;;  %s2891_s11 = inlined_call_operand.hbm [shape: f32[8,8], index: 11, kind: output, shape index: {8}]  }
   0x1   :  { %18 = vsyncpa [#allocation5], 0 }
   0x2   :  { %19 = vsyncpa [#allocation8], 0  ;;  %v31_v0 = vld [vmem:[%s2881_s1] sm:$0xff]  ;;  %v32_v1 = vld [vmem:[%s2881_s1 + $0x8] sm:$0xff] }
   0x3   :  { %v33_v2 = vld [vmem:[%s2881_s1 + $0x10] sm:$0xff]  ;;  %37 = vxpose.xlu0.b32.start [1/4] (short) (narrow) %v31_v0, 16  ;;  %v2447_v3 = vpack.c.bf16 %v32_v1, %v31_v0  ;;  %v34_v4 = vld [vmem:[%s2881_s1 + $0x18] sm:$0xff]  ;;  %v2455_v5 = vld [vmem:[%s2880_s0] sm:$0xff] }
   0x4   :  { %v2460_v6 = vld [vmem:[%s2880_s0 + $0x8] sm:$0xff]  ;;  %v2462_v7 = vpack.c.bf16 %v34_v4, %v33_v2  ;;  %v2469_v9 = vld [vmem:[%s2880_s0 + $0x10] sm:$0xff]  ;;  %v2474_v10 = vld [vmem:[%s2880_s0 + $0x18] sm:$0xff] }
   0x5   :  { %v2114_v8 = vpack.c.bf16 %v2460_v6, %v2455_v5 }
   0x6   :  { %20 = vsyncpa [#allocation11], 0  ;;  %v2118_v11 = vpack.c.bf16 %v2474_v10, %v2469_v9  ;;  %2123 = vmatprep.subr.bf16.mxu1 %v2447_v3  ;;  %vm69_vm0 = vcmask 261120   ;;  %v35_v14 = vld [vmem:[%s2882_s2] sm:$0xff]  ;;  %v36_v15 = vld [vmem:[%s2882_s2 + $0x8] sm:$0xff]  ;;  %v411_v16 = vlaneseq  ;;  %v2366_v45 = vmov 0.0  }
   0x7   :  { %2115 = vmatprep.subr.bf16.mxu0 %v2114_v8  ;;  %2125 = vmatpush3.bf16.msra.mxu1 %v2447_v3  ;;  %v2490_v17 = vpack.c.bf16 %v36_v15, %v35_v14  ;;  %v2367_v50 = vmov 0.0|0.0   ;;  %vm2368_vm5 = vmmov 0   ;;  %vm264_vm6 = vcmask 130048   ;;  %s2370_s27 = smov [#allocation7]  }
   0x8   :  { %38 = vxpose.xlu0.b32.cont [2/4] (short) (narrow) %v32_v1, 16  ;;  %2117 = vmatpush3.bf16.msra.mxu0 %v2114_v8  ;;  %v2492_v18 = vshrl.u32 %v411_v16, 7  ;;  %v2494_v19 = vand.u32 127, %v411_v16  ;;  %vm1065_vm7 = vcmask 64512   ;;  %s1795_s28 = sshll.u32 %s2370_s27, 4  ;;  %s2756_s28 = int_to_ptr.vmem [resolvable:$true] %s1795_s28 }
   0x9   :  { %2119 = vmatprep.subr.bf16.mxu0 %v2118_v11  ;;  %2127 = vmatprep.subr.bf16.mxu1 %v2462_v7 }
   0xa   :  { %232 = vxpose.xlu1.b32.start [1/2] (short) (narrow) %v35_v14, 8  ;;  %vm418_vm1 = vcmp.eq.s32.totalorder %v2492_v18, %v2494_v19  ;;  %v2499_v20 = vadd.s32 8, %v2492_v18  ;;  %v2502_v21 = vadd.s32 16, %v2492_v18  ;;  %v2505_v22 = vadd.s32 24, %v2492_v18 }
   0xb   :  { %2129 = vmatpush3.bf16.msra.mxu1 %v2462_v7  ;;  %v426_v23 = vsel %vm418_vm1, %v2455_v5, 0.0  ;;  %v2545_v46 = vsel %vm418_vm1, 1.0, %v2366_v45 }
   0xc   :  { %39 = vxpose.xlu0.b32.cont [3/4] (short) (narrow) %v33_v2, 16  ;;  %2121 = vmatpush3.bf16.msra.mxu0 %v2118_v11  ;;  %vm419_vm2 = vcmp.eq.s32.totalorder %v2499_v20, %v2494_v19  ;;  %vm420_vm3 = vcmp.eq.s32.totalorder %v2502_v21, %v2494_v19  ;;  %vm421_vm4 = vcmp.eq.s32.totalorder %v2505_v22, %v2494_v19  ;;  %v430_v26 = vsel %vm69_vm0, %v426_v23, 0.0 }
   0xd   :  { %v427_v24 = vsel %vm419_vm2, %v2460_v6, 0.0  ;;  %v428_v25 = vsel %vm420_vm3, %v2469_v9, 0.0  ;;  %v429_v29 = vsel %vm421_vm4, %v2474_v10, 0.0  ;;  %v2551_v47 = vsel %vm419_vm2, 1.0, %v2366_v45  ;;  %2130 = vmatprep.subr.bf16.mxu0 %v2367_v50  ;;  %2133 = vmatprep.subr.bf16.mxu1 %v2367_v50 }
   0xe   :  { %233 = vxpose.xlu1.b32.end [2/2] (short) (narrow) %v36_v15, 8  ;;  %v433_v27 = vsel %vm69_vm0, %v427_v24, 0.0  ;;  %v436_v30 = vsel %vm69_vm0, %v428_v25, 0.0  ;;  %v439_v32 = vsel %vm69_vm0, %v429_v29, 0.0  ;;  %v2575_v60 = vsel %vm420_vm3, 1.0, %v2366_v45 }
   0xf   :  { %v450_v28 = vadd.f32 %v433_v27, %v430_v26  ;;  %v2581_v61 = vsel %vm421_vm4, 1.0, %v2366_v45 }
  0x10   :  { %40 = vxpose.xlu0.b32.end [4/4] (short) (narrow) %v34_v4, 16 }
  0x11   :  { %v451_v31 = vadd.f32 %v450_v28, %v436_v30 }
  0x13   :  { %v2533_v33 = vadd.f32 %v451_v31, %v439_v32 }
  0x15   :  { %v453_v11 = vrot.slane %v2533_v33, 4 }
  0x35   :  { %431 = vadd.xlane.f32.xlu1 %v430_v26 }
  0x39   :  { %437 = vadd.xlane.f32.xlu1 %v436_v30 }
  0x3d   :  { %434 = vadd.xlane.f32.xlu0 %v433_v27  ;;  %440 = vadd.xlane.f32.xlu1 %v439_v32 }
  0x84   :  { %v53_v12 = vpop.trf.xlu0 }
  0x85   :  { %1978 = vmatprep.mubr.msk.f32.mxu0 %vm69_vm0, %v53_v12 }
  0x88   :  { %v54_v13 = vpop.trf.xlu0 }
  0x89   :  { %1979 = vmatmul.mubr.msk.f32.vlgmr.msra.gmra.mrb[0].mxu0 %vm69_vm0, %v54_v13  ;;  %v454_v13 = vadd.f32 %v453_v11, %v2533_v33 }
  0x8a   :  { %v248_v36 = vpop.trf.xlu1  ;;  %1996 = vmatprep.mubr.msk.f32.mxu0 %vm2368_vm5, %v2366_v45 }
  0x8b   :  { %v455_v15 = vrot.slane %v454_v13, 2 }
  0x8d   :  { %v456_v16 = vadd.f32 %v455_v15, %v454_v13 }
  0xc2   :  { %v432_v38 = vpop.xlane.xlu1 %431 }
  0xc6   :  { %v438_v52 = vpop.xlane.xlu1 %437 }
  0xca   :  { %v435_v37 = vpop.xlane.xlu0 %434  ;;  %v441_v53 = vpop.xlane.xlu1 %440 }
  0xcb   :  { %2184 = vrcp.f32 %v435_v37 }
  0xcc   :  { %2186 = vrcp.f32 %v432_v38 }
  0xcd   :  { %2188 = vrcp.f32 %v438_v52 }
  0xce   :  { %2190 = vrcp.f32 %v441_v53 }
  0xd5   :  { %v2185_v39 = vpop.eup %2184 }
  0xd6   :  { %v2187_v40 = vpop.eup %2186  ;;  %v445_v42 = vmul.f32 0.6666667, %v2185_v39 }
  0xd7   :  { %v443_v41 = vmul.f32 0.6666667, %v2187_v40  ;;  %v2189_v54 = vpop.eup %2188 }
  0xd8   :  { %v462_v44 = vmul.f32 %v445_v42, %v2460_v6  ;;  %v2191_v55 = vpop.eup %2190  ;;  %v447_v56 = vmul.f32 0.6666667, %v2189_v54 }
  0xd9   :  { %v461_v43 = vmul.f32 %v443_v41, %v2455_v5  ;;  %v449_v57 = vmul.f32 0.6666667, %v2191_v55 }
  0xda   :  { %v2557_v49 = vsub.f32 %v2551_v47, %v462_v44  ;;  %v463_v58 = vmul.f32 %v447_v56, %v2469_v9 }
  0xdb   :  { %v2554_v48 = vsub.f32 %v2545_v46, %v461_v43  ;;  %v464_v59 = vmul.f32 %v449_v57, %v2474_v10 }
  0xdc   :  { %v2584_v63 = vsub.f32 %v2575_v60, %v463_v58  ;;  %v664_v33 = vadd.f32 %v2557_v49, %v2551_v47 }
  0xdd   :  { %v2564_v51 = vpack.c.bf16 %v2557_v49, %v2554_v48  ;;  %v2587_v0 = vsub.f32 %v2581_v61, %v464_v59 }
  0xde   :  { %v665_v43 = vadd.f32 %v2584_v63, %v2575_v60 }
  0xdf   :  { %v2140_v10 = vpack.c.bf16 %v2587_v0, %v2584_v63  ;;  %v666_v40 = vadd.f32 %v2587_v0, %v2581_v61 }
 0x15c   :  { %v1980_v34 = vpop.f32.mrb[0].mxu0 }
 0x15d   :  { %781 = vst.msk [vmem:[#allocation6 + $0x8] sm:$0xff] %vm69_vm0, %v1980_v34  ;;  %v142_v35 = vpop.f32.mrb[1].mxu0 }
 0x15e   :  { %780 = vst.msk [vmem:[#allocation6] sm:$0xff] %vm69_vm0, %v142_v35  ;;  %1989 = vmatprep.mubr.msk.f32.mxu1 %vm69_vm0, %v142_v35  ;;  %v663_v35 = vadd.f32 %v2554_v48, %v2545_v46 }
 0x15f   :  { %1990 = vmatmul.mubr.msk.f32.vlgmr.msra.gmra.mrb[0].mxu1 %vm69_vm0, %v1980_v34 }
 0x160   :  { %2135 = vmatpush3.bf16.msra.mxu1 %v2490_v17  ;;  %2003 = vmatprep.mubr.msk.f32.mxu1 %vm2368_vm5, %v2366_v45 }
 0x161   :  { %2145 = vmatprep.subr.bf16.mxu1 %v2564_v51 }
 0x232   :  { %v1991_v62 = vpop.f32.mrb[0].mxu1 }
 0x233   :  { %v223_v1 = vpop.f32.mrb[1].mxu1  ;;  %v787_v2 = vsel %vm419_vm2, %v1991_v62, 0.0 }
 0x234   :  { %v2131_v4 = vpack.c.bf16 %v1991_v62, %v223_v1  ;;  %v786_v5 = vsel %vm418_vm1, %v223_v1, 0.0  ;;  %v791_v6 = vsel %vm264_vm6, %v787_v2, 0.0 }
 0x235   :  { %v788_v8 = vsel %vm264_vm6, %v786_v5, 0.0 }
 0x236   :  { %789 = vadd.xlane.f32.xlu1 %v788_v8  ;;  %2132 = vmatpush3.bf16.msra.mxu0 %v2131_v4  ;;  %v2597_v9 = vadd.f32 %v791_v6, %v788_v8 }
 0x237   :  { %2137 = vmatprep.subr.bf16.mxu0 %v2564_v51 }
 0x238   :  { %v799_v52 = vrot.slane %v2597_v9, 4 }
 0x239   :  { %1997 = vmatmul.mubr.msk.f32.vlgmr.msra.gmra.mrb[2].mxu0 %vm264_vm6, %v248_v36 }
 0x23a   :  { %792 = vadd.xlane.f32.xlu1 %v791_v6  ;;  %2139 = vmatpush3.bf16.msra.mxu0 %v2564_v51  ;;  %v800_v53 = vadd.f32 %v799_v52, %v2597_v9 }
 0x23b   :  { %2141 = vmatprep.subr.bf16.mxu0 %v2140_v10  ;;  %2014 = vmatprep.mubr.msk.f32.mxu0 %vm69_vm0, %v2554_v48 }
 0x23c   :  { %v801_v54 = vrot.slane %v800_v53, 2 }
 0x23e   :  { %2143 = vmatpush3.bf16.msra.mxu0 %v2140_v10  ;;  %v802_v55 = vadd.f32 %v801_v54, %v800_v53 }
 0x23f   :  { %2153 = vmatprep.subr.bf16.mxu0 %v2447_v3 }
 0x240   :  { %v803_v56 = vrot.slane %v802_v55, 1 }
 0x241   :  { %2015 = vmatmul.mubr.msk.f32.vlgmr.msra.gmra.mrb[4].mxu0 %vm69_vm0, %v2557_v49 }
 0x242   :  { %2017 = vmatprep.mubr.msk.f32.mxu0 %vm69_vm0, %v2584_v63  ;;  %2155 = vmatpush3.bf16.msra.mxu0 %v2447_v3  ;;  %v457_v3 = vrot.slane %v456_v16, 1  ;;  %v804_v60 = vadd.f32 %v803_v56, %v802_v55 }
 0x243   :  { %2157 = vmatprep.subr.bf16.mxu0 %v2462_v7 }
 0x244   :  { %v458_v21 = vadd.f32 %v457_v3, %v456_v16 }
 0x245   :  { %2018 = vmatmul.mubr.msk.f32.gmra.mrb[6].mxu0 %vm69_vm0, %v2587_v0 }
 0x246   :  { %2159 = vmatpush3.bf16.msra.mxu0 %v2462_v7 }
 0x247   :  { %2169 = vmatprep.subr.bf16.mxu0 %v2490_v17 }
 0x2c3   :  { %v790_v12 = vpop.xlane.xlu1 %789 }
 0x2c7   :  { %v793_v14 = vpop.xlane.xlu1 %792 }
 0x2c8   :  { %2192 = vrcp.f32 %v793_v14 }
 0x2c9   :  { %2194 = vrcp.f32 %v790_v12 }
 0x2ca   :  { %2196 = vrcp.f32 %v458_v21 }
 0x2cb   :  { %2198 = vrcp.f32 %v804_v60 }
 0x2d2   :  { %v2193_v20 = vpop.eup %2192 }
 0x2d3   :  { %v2195_v22 = vpop.eup %2194  ;;  %v797_v23 = vmul.f32 0.6666667, %v2193_v20 }
 0x2d4   :  { %v795_v24 = vmul.f32 0.6666667, %v2195_v22  ;;  %v2197_v30 = vpop.eup %2196 }
 0x2d5   :  { %v808_v7 = vmul.f32 %v1991_v62, %v797_v23  ;;  %v460_v32 = vmul.f32 0.6666667, %v2197_v30  ;;  %v2199_v0 = vpop.eup %2198 }
 0x2d6   :  { %v807_v25 = vmul.f32 %v795_v24, %v223_v1 }
 0x2d7   :  { %v2620_v27 = vsub.f32 %v2551_v47, %v808_v7 }
 0x2d8   :  { %v2626_v29 = vsub.f32 %v2545_v46, %v807_v25 }
 0x2d9   :  { %v974_v1 = vadd.f32 %v2620_v27, %v2551_v47 }
 0x2da   :  { %v2160_v31 = vpack.c.bf16 %v2620_v27, %v2626_v29  ;;  %v973_v4 = vadd.f32 %v2626_v29, %v2545_v46 }
 0x30c   :  { %v334_v26 = vpop.f32.mrb[2].mxu0 }
 0x30d   :  { %1064 = vst.msk [vmem:[#allocation10] sm:$0xff] %vm264_vm6, %v334_v26  ;;  %v1998_v28 = vpop.f32.mrb[3].mxu0  ;;  %2004 = vmatmul.mubr.msk.f32.vlgmr.msra.gmra.mrb[2].mxu1 %vm264_vm6, %v334_v26 }
 0x30e   :  { %2147 = vmatpush3.bf16.msra.mxu1 %v2564_v51 }
 0x30f   :  { %2149 = vmatprep.subr.bf16.mxu1 %v2140_v10 }
 0x312   :  { %2151 = vmatpush3.bf16.msra.mxu1 %v2140_v10 }
 0x313   :  { %2161 = vmatprep.subr.bf16.mxu1 %v2160_v31 }
 0x314   :  { %v2016_v34 = vpop.f32.mrb[4].mxu0 }
 0x315   :  { %v668_v36 = vadd.f32 %v2016_v34, %v664_v33  ;;  %v547_v37 = vpop.f32.mrb[5].mxu0 }
 0x316   :  { %v667_v38 = vadd.f32 %v663_v35, %v547_v37  ;;  %2028 = vmatprep.mubr.msk.f32.mxu1 %vm69_vm0, %v547_v37 }
 0x317   :  { %v672_v39 = vmul.f32 %v668_v36, %v460_v32  ;;  %2029 = vmatmul.mubr.msk.f32.vlgmr.msra.gmra.mrb[4].mxu1 %vm69_vm0, %v2016_v34 }
 0x318   :  { %v671_v41 = vmul.f32 %v667_v38, %v460_v32  ;;  %2163 = vmatpush3.bf16.msra.mxu1 %v2160_v31  ;;  %v2019_v42 = vpop.f32.mrb[6].mxu0 }
 0x319   :  { %777 = vst.msk [vmem:[#allocation4 + $0x8] sm:$0xff] %vm69_vm0, %v672_v39  ;;  %v670_v44 = vadd.f32 %v2019_v42, %v666_v40  ;;  %2165 = vmatprep.subr.bf16.mxu1 %v2160_v31  ;;  %v557_v48 = vpop.f32.mrb[7].mxu0 }
 0x31a   :  { %776 = vst.msk [vmem:[#allocation4] sm:$0xff] %vm69_vm0, %v671_v41  ;;  %v669_v49 = vadd.f32 %v665_v43, %v557_v48  ;;  %2031 = vmatprep.mubr.msk.f32.mxu1 %vm69_vm0, %v557_v48 }
 0x31b   :  { %v674_v50 = vmul.f32 %v670_v44, %v460_v32  ;;  %2032 = vmatmul.mubr.msk.f32.gmra.mrb[6].mxu1 %vm69_vm0, %v2019_v42 }
 0x31c   :  { %v673_v51 = vmul.f32 %v669_v49, %v460_v32  ;;  %2052 = vmatprep.mubr.msk.f32.mxu1 %vm264_vm6, %v2626_v29 }
 0x31d   :  { %779 = vst.msk [vmem:[#allocation4 + $0x18] sm:$0xff] %vm69_vm0, %v674_v50 }
 0x31e   :  { %778 = vst.msk [vmem:[#allocation4 + $0x10] sm:$0xff] %vm69_vm0, %v673_v51 }
 0x31f   :  { %2053 = vmatmul.mubr.msk.f32.vlgmr.msra.gmra.mrb[8].mxu1 %vm264_vm6, %v2620_v27 }
 0x320   :  { %2167 = vmatpush3.bf16.msra.mxu1 %v2160_v31 }
 0x321   :  { %2069 = vmatprep.subr.mxu1 %v2366_v45 }
 0x3e0   :  { %v407_v57 = vpop.f32.mrb[2].mxu1 }
 0x3e1   :  { %v1068_v58 = vsel %vm418_vm1, %v407_v57, 0.0  ;;  %v2005_v59 = vpop.f32.mrb[3].mxu1 }
 0x3e2   :  { %v2657_v61 = vsel %vm1065_vm7, %v1068_v58, 0.0 }
 0x3e3   :  { %1070 = vadd.xlane.f32.xlu0 %v2657_v61 }
 0x3ea   :  { %v2030_v62 = vpop.f32.mrb[4].mxu1 }
 0x3eb   :  { %773 = vst.msk [vmem:[#allocation2 + $0x8] sm:$0xff] %vm69_vm0, %v2030_v62  ;;  %v644_v63 = vpop.f32.mrb[5].mxu1 }
 0x3ec   :  { %772 = vst.msk [vmem:[#allocation2] sm:$0xff] %vm69_vm0, %v644_v63  ;;  %2042 = vmatprep.mubr.msk.f32.mxu0 %vm69_vm0, %v644_v63 }
 0x3ed   :  { %2043 = vmatmul.mubr.msk.f32.vlgmr.msra.gmra.mrb[8].mxu0 %vm69_vm0, %v2030_v62 }
 0x3ee   :  { %v2033_v18 = vpop.f32.mrb[6].mxu1  ;;  %2171 = vmatpush3.bf16.msra.mxu0 %v2490_v17  ;;  %v806_v17 = vmul.f32 0.6666667, %v2199_v0 }
 0x3ef   :  { %775 = vst.msk [vmem:[#allocation2 + $0x18] sm:$0xff] %vm69_vm0, %v2033_v18  ;;  %v654_v19 = vpop.f32.mrb[7].mxu1  ;;  %2074 = vmatprep.subr.mxu0 %v2366_v45 }
 0x3f0   :  { %774 = vst.msk [vmem:[#allocation2 + $0x10] sm:$0xff] %vm69_vm0, %v654_v19  ;;  %2045 = vmatprep.mubr.msk.f32.mxu0 %vm69_vm0, %v654_v19 }
 0x3f1   :  { %2046 = vmatmul.mubr.msk.f32.gmra.mrb[10].mxu0 %vm69_vm0, %v2033_v18 }
 0x3f2   :  { %v2054_v2 = vpop.f32.mrb[8].mxu1 }
 0x3f3   :  { %v976_v5 = vadd.f32 %v2054_v2, %v974_v1  ;;  %v883_v6 = vpop.f32.mrb[9].mxu1 }
 0x3f4   :  { %v975_v8 = vadd.f32 %v973_v4, %v883_v6  ;;  %2059 = vmatprep.mubr.msk.f32.mxu1 %vm264_vm6, %v883_v6 }
 0x3f5   :  { %v978_v9 = vmul.f32 %v976_v5, %v806_v17  ;;  %2060 = vmatmul.mubr.msk.f32.vlgmr.msra.gmra.mrb[10].mxu1 %vm264_vm6, %v2054_v2 }
 0x3f6   :  { %v977_v10 = vmul.f32 %v975_v8, %v806_v17  ;;  %2071 = vmatprep.mubr.msk.f32.mxu1 %vm2368_vm5, %v2366_v45 }
 0x3f7   :  { %1063 = vst.msk [vmem:[#allocation9 + $0x8] sm:$0xff] %vm264_vm6, %v978_v9 }
 0x3f8   :  { %1062 = vst.msk [vmem:[#allocation9] sm:$0xff] %vm264_vm6, %v977_v10 }
 0x470   :  { %v1071_v47 = vpop.xlane.xlu0 %1070 }
 0x471   :  { %2200 = vrcp.f32 %v1071_v47 }
 0x47b   :  { %v2201_v11 = vpop.eup %2200 }
 0x47c   :  { %v1073_v12 = vmul.f32 0.6666667, %v2201_v11 }
 0x47e   :  { %v1082_v13 = vmul.f32 %v1073_v12, %v407_v57 }
 0x480   :  { %v2681_v14 = vsub.f32 %v2545_v46, %v1082_v13 }
 0x482   :  { %2070 = vmatpush3.msra.mxu1 %v2681_v14 }
 0x483   :  { %2072 = vmatmul.mubr.msk.f32.vlgmr.msra.gmra.mrb[12].mxu1 %vm1065_vm7, %v2545_v46  ;;  %2079 = vmatprep.subr.mxu1 %v2366_v45 }
 0x484   :  { %2080 = vmatpush3.msra.mxu1 %v2681_v14  ;;  %2081 = vmatprep.mubr.msk.f32.mxu1 %vm2368_vm5, %v2366_v45 }
 0x485   :  { %2089 = vmatprep.subr.mxu1 %v2366_v45 }
 0x4c0   :  { %v2044_v15 = vpop.f32.mrb[8].mxu0 }
 0x4c1   :  { %783 = vst.msk [vmem:[%s2886_s6 + $0x8] sm:$0xff] %vm264_vm6, %v2044_v15  ;;  %v753_v16 = vpop.f32.mrb[9].mxu0 }
 0x4c2   :  { %782 = vst.msk [vmem:[%s2886_s6] sm:$0xff] %vm264_vm6, %v753_v16 }
 0x4c4   :  { %v2047_v3 = vpop.f32.mrb[10].mxu0 }
 0x4c5   :  { %785 = vst.msk [vmem:[%s2886_s6 + $0x18] sm:$0xff] %vm264_vm6, %v2047_v3  ;;  %v763_v20 = vpop.f32.mrb[11].mxu0 }
 0x4c6   :  { %784 = vst.msk [vmem:[%s2886_s6 + $0x10] sm:$0xff] %vm264_vm6, %v763_v20 }
 0x4c8   :  { %v2061_v21 = vpop.f32.mrb[10].mxu1 }
 0x4c9   :  { %1061 = vst.msk [vmem:[#allocation7 + $0x8] sm:$0xff] %vm264_vm6, %v2061_v21  ;;  %v964_v22 = vpop.f32.mrb[11].mxu1 }
 0x4ca   :  { %1060 = vst.msk [vmem:[#allocation7] sm:$0xff] %vm264_vm6, %v964_v22  ;;  %2066 = vmatprep.mubr.msk.f32.mxu0 %vm264_vm6, %v964_v22 }
 0x4cb   :  { %2067 = vmatmul.mubr.msk.f32.vlgmr.msra.gmra.mrb[12].mxu0 %vm264_vm6, %v2061_v21 }
 0x4cc   :  { %2075 = vmatpush3.msra.mxu0 %v2681_v14  ;;  %2076 = vmatprep.mubr.msk.f32.mxu0 %vm2368_vm5, %v2366_v45 }
 0x4cd   :  { %2084 = vmatprep.subr.mxu0 %v2366_v45 }
 0x556   :  { %v1153_v23 = vpop.f32.mrb[12].mxu1 }
 0x557   :  { %2077 = vmatmul.mubr.msk.f32.vlgmr.msra.gmra.mrb[14].mxu0 %vm1065_vm7, %v1153_v23  ;;  %v2073_v24 = vpop.f32.mrb[13].mxu1  ;;  %v1157_v26 = vadd.f32 %v1153_v23, %v2545_v46 }
 0x558   :  { %2085 = vmatpush3.msra.mxu0 %v2681_v14  ;;  %2086 = vmatprep.mubr.msk.f32.mxu0 %vm2368_vm5, %v2366_v45 }
 0x559   :  { %2094 = vmatprep.subr.mxu0 %v2366_v45 }
 0x59e   :  { %v2068_v7 = vpop.f32.mrb[12].mxu0 }
 0x59f   :  { %1067 = vst.msk [vmem:[%s2890_s10 + $0x8] sm:$0xff] %vm1065_vm7, %v2068_v7  ;;  %v1051_v25 = vpop.f32.mrb[13].mxu0 }
 0x5a0   :  { %1066 = vst.msk [vmem:[%s2890_s10] sm:$0xff] %vm1065_vm7, %v1051_v25  ;;  %s2369_s10 = smov [#allocation4]  }
 0x5a1   :  { %s1769_s26 = sshll.u32 %s2369_s10, 4  ;;  %s1770_s26 = int_to_ptr.vmem [resolvable:$true] %s1769_s26 }
 0x5a2   :  { %s2204_s29 = scalar_lea.vmem %s1770_s26, 512  ;;  %p2209_p1 = scmp.lt.s32.totalorder %s1770_s26, %s1770_s26 }
 0x5a3   :  { %p2205_p0 = scmp.ne.s32.totalorder %s1770_s26, %s2204_s29  ;;  %p2210_p2 = scmp.lt.s32.totalorder %s2204_s29, %s2204_s29 }
 0x5a5   :  { %p2211_p3 = por %p2210_p2, %p2209_p1 }
 0x5a7   :  { %p2212_p4 = pnand %p2211_p3, %p2205_p0 }
 0x62a   :  { %v1227_v27 = vpop.f32.mrb[14].mxu0 }
 0x62b   :  { %v1231_v28 = vadd.f32 %v1227_v27, %v1157_v26  ;;  %2082 = vmatmul.mubr.msk.f32.vlgmr.msra.gmra.mrb[14].mxu1 %vm1065_vm7, %v1227_v27  ;;  %v2078_v29 = vpop.f32.mrb[15].mxu0 }
 0x62c   :  { %2090 = vmatpush3.msra.mxu1 %v2681_v14  ;;  %2091 = vmatprep.mubr.msk.f32.mxu1 %vm2368_vm5, %v2366_v45 }
 0x62d   :  { %2099 = vmatprep.subr.mxu1 %v2366_v45 }
 0x6fe   :  { %v1301_v30 = vpop.f32.mrb[14].mxu1 }
 0x6ff   :  { %v1305_v31 = vadd.f32 %v1301_v30, %v1231_v28  ;;  %2087 = vmatmul.mubr.msk.f32.vlgmr.msra.gmra.mrb[16].mxu0 %vm1065_vm7, %v1301_v30  ;;  %v2083_v32 = vpop.f32.mrb[15].mxu1 }
 0x700   :  { %2095 = vmatpush3.msra.mxu0 %v2681_v14  ;;  %2096 = vmatprep.mubr.msk.f32.mxu0 %vm2368_vm5, %v2366_v45 }
 0x701   :  { %2104 = vmatprep.subr.mxu0 %v2366_v45 }
 0x7d2   :  { %v1375_v46 = vpop.f32.mrb[16].mxu0 }
 0x7d3   :  { %v1379_v33 = vadd.f32 %v1375_v46, %v1305_v31  ;;  %2092 = vmatmul.mubr.msk.f32.vlgmr.msra.gmra.mrb[16].mxu1 %vm1065_vm7, %v1375_v46  ;;  %v2088_v34 = vpop.f32.mrb[17].mxu0 }
 0x7d4   :  { %2100 = vmatpush3.msra.mxu1 %v2681_v14  ;;  %2101 = vmatprep.mubr.msk.f32.mxu1 %vm2368_vm5, %v2366_v45 }
 0x7d5   :  { %2109 = vmatprep.subr.mxu1 %v2366_v45 }
 0x8a6   :  { %v1449_v35 = vpop.f32.mrb[16].mxu1 }
 0x8a7   :  { %v1453_v36 = vadd.f32 %v1449_v35, %v1379_v33  ;;  %2097 = vmatmul.mubr.msk.f32.vlgmr.msra.gmra.mrb[18].mxu0 %vm1065_vm7, %v1449_v35  ;;  %v2093_v37 = vpop.f32.mrb[17].mxu1 }
 0x8a8   :  { %2105 = vmatpush3.msra.mxu0 %v2681_v14  ;;  %2106 = vmatprep.mubr.msk.f32.mxu0 %vm2368_vm5, %v2366_v45 }
 0x97a   :  { %v1523_v38 = vpop.f32.mrb[18].mxu0 }
 0x97b   :  { %v1527_v39 = vadd.f32 %v1523_v38, %v1453_v36  ;;  %2102 = vmatmul.mubr.msk.f32.vlgmr.msra.gmra.mrb[18].mxu1 %vm1065_vm7, %v1523_v38  ;;  %v2098_v40 = vpop.f32.mrb[19].mxu0 }
 0x97c   :  { %2110 = vmatpush3.msra.mxu1 %v2681_v14  ;;  %2111 = vmatprep.mubr.msk.f32.mxu1 %vm2368_vm5, %v2366_v45 }
 0xa4e   :  { %v1597_v41 = vpop.f32.mrb[18].mxu1 }
 0xa4f   :  { %v1601_v42 = vadd.f32 %v1597_v41, %v1527_v39  ;;  %2107 = vmatmul.mubr.msk.f32.vlgmr.msra.gmra.mrb[20].mxu0 %vm1065_vm7, %v1597_v41  ;;  %v2103_v43 = vpop.f32.mrb[19].mxu1 }
 0xb22   :  { %v1671_v44 = vpop.f32.mrb[20].mxu0 }
 0xb23   :  { %v2753_v48 = vadd.f32 %v1671_v44, %v1601_v42  ;;  %2112 = vmatmul.mubr.msk.f32.vlgmr.msra.gmra.mrb[20].mxu1 %vm1065_vm7, %v1671_v44  ;;  %v2108_v49 = vpop.f32.mrb[21].mxu0 }
 0xb24   :  { %2215 = shalt.err (!%p2212_p4)
}
 0xb25   :  { %s2216_s12 = scalar_lea.hbm %s2884_s4, 512 }
 0xb26   :  { %p2217_p5 = scmp.ne.s32.totalorder %s2884_s4, %s2216_s12  ;;  %p2220_p6 = scmp.lt.u32.totalorder %s2216_s12, %s2884_s4 }
 0xb28   :  { %p2222_p7 = pnand %p2220_p6, %p2217_p5 }
 0xb2a   :  { %2225 = shalt.err (!%p2222_p7)
}
 0xb2b   :  { %s2371_s2 = smov 128   ;;  %s2372_s16 = smov 8  }
 0xb2c   :  { %1775 = dma.vmem_to_hbm [thread:$0]  %s1770_s26, 512, %s2884_s4, [#allocation5], %s2371_s2, %s2371_s2, %s2372_s16  }
 0xb2d   :  { %s2226_s19 = scalar_lea.vmem %s2756_s28, 256  ;;  %p2231_p9 = scmp.lt.s32.totalorder %s2756_s28, %s2756_s28 }
 0xb2e   :  { %p2227_p8 = scmp.ne.s32.totalorder %s2756_s28, %s2226_s19  ;;  %p2232_p10 = scmp.lt.s32.totalorder %s2226_s19, %s2226_s19 }
 0xb30   :  { %p2233_p11 = por %p2232_p10, %p2231_p9 }
 0xb32   :  { %p2234_p12 = pnand %p2233_p11, %p2227_p8 }
 0xb34   :  { %2237 = shalt.err (!%p2234_p12)
}
 0xb35   :  { %s2238_s22 = scalar_lea.hbm %s2887_s7, 256 }
 0xb36   :  { %p2239_p13 = scmp.ne.s32.totalorder %s2887_s7, %s2238_s22  ;;  %p2242_p0 = scmp.lt.u32.totalorder %s2238_s22, %s2887_s7 }
 0xb38   :  { %p2244_p1 = pnand %p2242_p0, %p2239_p13 }
 0xb3a   :  { %2247 = shalt.err (!%p2244_p1)
}
 0xb3b   :  { %1801 = dma.vmem_to_hbm [thread:$0]  %s2756_s28, 256, %s2887_s7, [#allocation8], %s2371_s2, %s2371_s2, %s2372_s16  }
 0xb3c   :  { %s2373_s26 = smov [#allocation10]   ;;  %s2374_s29 = smov [#allocation2]  }
 0xb3d   :  { %s1820_s27 = sshll.u32 %s2373_s26, 4  ;;  %s1757_s30 = sshll.u32 %s2374_s29, 4  ;;  %s1821_s27 = int_to_ptr.vmem [resolvable:$true] %s1820_s27  ;;  %s2793_s30 = int_to_ptr.vmem [resolvable:$true] %s1757_s30 }
 0xb3e   :  { %s2248_s1 = scalar_lea.vmem %s1821_s27, 128  ;;  %p2253_p3 = scmp.lt.s32.totalorder %s1821_s27, %s1821_s27 }
 0xb3f   :  { %p2249_p2 = scmp.ne.s32.totalorder %s1821_s27, %s2248_s1  ;;  %p2254_p4 = scmp.lt.s32.totalorder %s2248_s1, %s2248_s1 }
 0xb41   :  { %p2255_p5 = por %p2254_p4, %p2253_p3 }
 0xb43   :  { %p2256_p6 = pnand %p2255_p5, %p2249_p2 }
 0xb45   :  { %2259 = shalt.err (!%p2256_p6)
}
 0xb46   :  { %s2260_s13 = scalar_lea.hbm %s2889_s9, 128 }
 0xb47   :  { %p2261_p7 = scmp.ne.s32.totalorder %s2889_s9, %s2260_s13  ;;  %p2264_p8 = scmp.lt.u32.totalorder %s2260_s13, %s2889_s9 }
 0xb49   :  { %p2266_p9 = pnand %p2264_p8, %p2261_p7 }
 0xb4b   :  { %2269 = shalt.err (!%p2266_p9)
}
 0xb4c   :  { %1823 = dma.vmem_to_hbm [thread:$0]  %s1821_s27, 128, %s2889_s9, [#allocation11]  }
 0xb4d   :  { %s2270_s19 = scalar_lea.vmem %s2793_s30, 512  ;;  %p2275_p11 = scmp.lt.s32.totalorder %s2793_s30, %s2793_s30 }
 0xb4e   :  { %p2271_p10 = scmp.ne.s32.totalorder %s2793_s30, %s2270_s19  ;;  %p2276_p12 = scmp.lt.s32.totalorder %s2270_s19, %s2270_s19 }
 0xb50   :  { %p2277_p13 = por %p2276_p12, %p2275_p11 }
 0xb52   :  { %p2278_p0 = pnand %p2277_p13, %p2271_p10 }
 0xb54   :  { %2281 = shalt.err (!%p2278_p0)
}
 0xb55   :  { %s2282_s22 = scalar_lea.hbm %s2883_s3, 512 }
 0xb56   :  { %p2283_p1 = scmp.ne.s32.totalorder %s2883_s3, %s2282_s22  ;;  %p2286_p2 = scmp.lt.u32.totalorder %s2282_s22, %s2883_s3 }
 0xb58   :  { %p2288_p3 = pnand %p2286_p2, %p2283_p1 }
 0xb5a   :  { %2291 = shalt.err (!%p2288_p3)
}
 0xb5b   :  { %1763 = dma.vmem_to_hbm [thread:$0]  %s2793_s30, 512, %s2883_s3, [#allocation3], %s2371_s2, %s2371_s2, %s2372_s16  }
 0xb5c   :  { %s2375_s10 = smov [#allocation6]   ;;  %s2376_s27 = smov [#allocation9]  }
 0xb5d   :  { %s1781_s26 = sshll.u32 %s2375_s10, 4  ;;  %s1807_s29 = sshll.u32 %s2376_s27, 4  ;;  %s1782_s26 = int_to_ptr.vmem [resolvable:$true] %s1781_s26  ;;  %s2827_s29 = int_to_ptr.vmem [resolvable:$true] %s1807_s29 }
 0xb5e   :  { %s2292_s1 = scalar_lea.vmem %s1782_s26, 256  ;;  %p2297_p5 = scmp.lt.s32.totalorder %s1782_s26, %s1782_s26 }
 0xb5f   :  { %p2293_p4 = scmp.ne.s32.totalorder %s1782_s26, %s2292_s1  ;;  %p2298_p6 = scmp.lt.s32.totalorder %s2292_s1, %s2292_s1 }
 0xb61   :  { %p2299_p7 = por %p2298_p6, %p2297_p5 }
 0xb63   :  { %p2300_p8 = pnand %p2299_p7, %p2293_p4 }
 0xb65   :  { %2303 = shalt.err (!%p2300_p8)
}
 0xb66   :  { %s2304_s13 = scalar_lea.hbm %s2885_s5, 256 }
 0xb67   :  { %p2305_p9 = scmp.ne.s32.totalorder %s2885_s5, %s2304_s13  ;;  %p2308_p10 = scmp.lt.u32.totalorder %s2304_s13, %s2885_s5 }
 0xb69   :  { %p2310_p11 = pnand %p2308_p10, %p2305_p9 }
 0xb6b   :  { %2313 = shalt.err (!%p2310_p11)
}
 0xb6c   :  { %1787 = dma.vmem_to_hbm [thread:$0]  %s1782_s26, 256, %s2885_s5, [#allocation5], %s2371_s2, %s2371_s2, %s2372_s16  }
 0xb6d   :  { %s2314_s17 = scalar_lea.vmem %s2827_s29, 256  ;;  %p2319_p13 = scmp.lt.s32.totalorder %s2827_s29, %s2827_s29 }
 0xb6e   :  { %p2315_p12 = scmp.ne.s32.totalorder %s2827_s29, %s2314_s17  ;;  %p2320_p0 = scmp.lt.s32.totalorder %s2314_s17, %s2314_s17 }
 0xb70   :  { %p2321_p1 = por %p2320_p0, %p2319_p13 }
 0xb72   :  { %p2322_p2 = pnand %p2321_p1, %p2315_p12 }
 0xb74   :  { %2325 = shalt.err (!%p2322_p2)
}
 0xb75   :  { %s2326_s20 = scalar_lea.hbm %s2888_s8, 256 }
 0xb76   :  { %p2327_p3 = scmp.ne.s32.totalorder %s2888_s8, %s2326_s20  ;;  %p2330_p4 = scmp.lt.u32.totalorder %s2326_s20, %s2888_s8 }
 0xb78   :  { %p2332_p5 = pnand %p2330_p4, %p2327_p3 }
 0xb7a   :  { %2335 = shalt.err (!%p2332_p5)
}
 0xb7b   :  { %1813 = dma.vmem_to_hbm [thread:$0]  %s2827_s29, 256, %s2888_s8, [#allocation8], %s2371_s2, %s2371_s2, %s2372_s16   ;;  %v1074_v45 = vrot.slane %v2657_v61, 4 }
 0xb7c   :  { %s2377_s25 = smov [#allocation12]  }
 0xb7d   :  { %v1075_v50 = vadd.f32 %v1074_v45, %v2657_v61  ;;  %s1832_s9 = sshll.u32 %s2377_s25, 4  ;;  %s1833_s9 = int_to_ptr.vmem [resolvable:$true] %s1832_s9 }
 0xb7e   :  { %s2336_s8 = scalar_lea.vmem %s1833_s9, 128  ;;  %p2341_p7 = scmp.lt.s32.totalorder %s1833_s9, %s1833_s9 }
 0xb7f   :  { %v1076_v51 = vrot.slane %v1075_v50, 2  ;;  %p2337_p6 = scmp.ne.s32.totalorder %s1833_s9, %s2336_s8  ;;  %p2342_p8 = scmp.lt.s32.totalorder %s2336_s8, %s2336_s8 }
 0xb81   :  { %v1077_v52 = vadd.f32 %v1076_v51, %v1075_v50  ;;  %p2343_p9 = por %p2342_p8, %p2341_p7 }
 0xb83   :  { %v1078_v53 = vrot.slane %v1077_v52, 1  ;;  %p2344_p10 = pnand %p2343_p9, %p2337_p6 }
 0xb85   :  { %v1079_v54 = vadd.f32 %v1078_v53, %v1077_v52 }
 0xb87   :  { %2202 = vrcp.f32 %v1079_v54 }
 0xb91   :  { %v2203_v55 = vpop.eup %2202 }
 0xb92   :  { %v1081_v57 = vmul.f32 0.6666667, %v2203_v55 }
 0xbf6   :  { %v1745_v56 = vpop.f32.mrb[20].mxu1 }
 0xbf7   :  { %v1749_v58 = vadd.f32 %v1745_v56, %v2753_v48  ;;  %v2113_v59 = vpop.f32.mrb[21].mxu1 }
 0xbf9   :  { %v1750_v60 = vmul.f32 %v1749_v58, %v1081_v57 }
 0xbfb   :  { %1751 = vst.msk [vmem:[#allocation12] sm:$0xff] %vm1065_vm7, %v1750_v60 }
 0xbfc   :  { %2347 = shalt.err (!%p2344_p10)
}
 0xbfd   :  { %s2348_s4 = scalar_lea.hbm %s2891_s11, 128 }
 0xbfe   :  { %p2349_p11 = scmp.ne.s32.totalorder %s2891_s11, %s2348_s4  ;;  %p2352_p12 = scmp.lt.u32.totalorder %s2348_s4, %s2891_s11 }
 0xc00   :  { %p2354_p13 = pnand %p2352_p12, %p2349_p11 }
 0xc02   :  { %2357 = shalt.err (!%p2354_p13)
}
 0xc03   :  { %1835 = dma.vmem_to_hbm [thread:$0]  %s1833_s9, 128, %s2891_s11, [#allocation11]  }
 0xc04   :  { %2358 = dma.done.wait [#allocation3], 512  }
 0xc05   :  { %2359 = vsyncadd [#allocation3], 4294966784 }
 0xc06   :  { %2360 = dma.done.wait [#allocation5], 768  }
 0xc07   :  { %2361 = vsyncadd [#allocation5], 4294966528 }
 0xc08   :  { %2362 = dma.done.wait [#allocation8], 512  }
 0xc09   :  { %2363 = vsyncadd [#allocation8], 4294966784 }
 0xc0a   :  { %2364 = dma.done.wait [#allocation11], 256  }
 0xc0b   :  { %2365 = vsyncadd [#allocation11], 4294967040 }
 0xc0c   :  { %1861 = vsyncpa [#allocation3], 1 }
 0xc0d   :  { %1862 = vsyncpa [#allocation5], 1 }
 0xc0e   :  { %1863 = vsyncpa [#allocation8], 1 }
 0xc0f   :  { %1864 = vsyncpa [#allocation11], 1 }

</bundles_post_ra>
